<compile_context>
chip_gen: v5e
topology: v5e:2x2
jax: 0.10.0
libtpu: 0.0.40
codegen_flags: <defaults>
</compile_context>

<pallas_src>
import jax
import jax.numpy as jnp
from jax.experimental import pallas as pl
from jax.experimental.pallas import tpu as pltpu


def _round_up(x, m):
    return (x + m - 1) // m * m


def _vmem_params():
    """Generation-aware (budget_for_tiles, vmem_limit_bytes)."""
    try:
        cap = int(pltpu.get_tpu_info().vmem_capacity_bytes)
    except Exception:
        cap = 64 << 20  # conservative default (v7x per-TC VMEM)
    if cap >= (128 << 20):      # v5e / v6e: 128 MiB physical VMEM
        limit = 100 << 20
    else:                       # v7x: 64 MiB per TC -> leave Mosaic headroom
        limit = 48 << 20
    budget = limit - (12 << 20)  # headroom for internal scratch / spills
    return budget, limit


def _choose_tm(M, Hp, out_bytes, vmem_budget, min_steps=2):
    """Largest row tile that fits the VMEM budget, with >=min_steps grid steps."""
    # Resident bf16 weights; the BlockSpec pipeline double-buffers them.
    weight_bytes = 2 * 2 * Hp * Hp * 2
    avail = max(vmem_budget - weight_bytes, 2 << 20)
    # Per-row VMEM: bf16 x tile (x2 bufs) + out tile (x2 bufs)
    #             + f32 intermediate h + bf16 cast temp of h.
    per_row = 2 * (2 * Hp) + 2 * (out_bytes * Hp) + (4 * Hp) + (2 * Hp)
    tm = int(avail // per_row)
    tm = min(tm, 8192)                     # raised cap (per-step overhead amortization)
    tm = min(tm, _round_up(M, 16))         # never exceed the (rounded) row count
    if M > 16 * min_steps:                 # keep >=min_steps steps for v7x's 2 TCs
        tm = min(tm, _round_up(pl.cdiv(M, min_steps), 16))
    tm = max(16, (tm // 16) * 16)          # multiple of 16 (bf16 sublane packing)
    return int(tm)


def ffn_kernel(x_ref, w1_ref, b1_ref, w2_ref, b2_ref, o_ref):
    # x_ref: (TM, Hp) bf16 tile of the flattened input.
    x = x_ref[...]

    # conv1 (k=1): bf16 operands on the MXU, f32 accumulation.
    h = jnp.dot(x, w1_ref[...], preferred_element_type=jnp.float32)
    # dropout1: identity (eval mode); bias + ReLU in f32.
    h = jnp.maximum(h + b1_ref[...], 0.0)

    # conv2 (k=1): bf16 operands on the MXU, f32 accumulation.
    y = jnp.dot(h.astype(jnp.bfloat16), w2_ref[...],
                preferred_element_type=jnp.float32)

    # dropout2: identity; fused bias + residual epilogue (residual from bf16 x).
    o_ref[...] = (y + b2_ref[...] + x.astype(jnp.float32)).astype(o_ref.dtype)


def pointwise_feedforward(x, w1, b1, w2, b2, *, tm=None):
    """x: (B, L, H); w1, w2: (H_out, H_in) PyTorch Conv1d weights (k=1 squeezed);
    b1, b2: (H,). Dropout layers are identity (inference)."""
    B, L, H = x.shape
    M = B * L

    # Lane-dense channel dimension only when needed.
    Hp = H if H % 128 == 0 else _round_up(max(H, 128), 128)
    pad_h = Hp - H

    # Flatten; cast to bf16 (fused with the H pad when one is needed).
    x2 = x.reshape(M, H).astype(jnp.bfloat16)
    if pad_h:
        x2 = jnp.pad(x2, ((0, 0), (0, pad_h)))

    # Pre-transpose + pre-cast weights to bf16 (no per-tile weight casts).
    w1_t = jnp.transpose(w1).astype(jnp.bfloat16)   # (H_in, H_out)
    w2_t = jnp.transpose(w2).astype(jnp.bfloat16)
    b1_r = b1.astype(jnp.float32).reshape(1, H)
    b2_r = b2.astype(jnp.float32).reshape(1, H)
    if pad_h:
        w1_t = jnp.pad(w1_t, ((0, pad_h), (0, pad_h)))
        w2_t = jnp.pad(w2_t, ((0, pad_h), (0, pad_h)))
        b1_r = jnp.pad(b1_r, ((0, 0), (0, pad_h)))
        b2_r = jnp.pad(b2_r, ((0, 0), (0, pad_h)))

    out_dtype = x.dtype
    budget, vmem_limit = _vmem_params()
    if tm is None:
        tm = _choose_tm(M, Hp, jnp.dtype(out_dtype).itemsize, budget)

    grid = (pl.cdiv(M, tm),)   # ragged last tile handled by masked stores

    out = pl.pallas_call(
        ffn_kernel,
        out_shape=jax.ShapeDtypeStruct((M, Hp), out_dtype),
        grid_spec=pltpu.PrefetchScalarGridSpec(
            num_scalar_prefetch=0,
            grid=grid,
            in_specs=[
                pl.BlockSpec((tm, Hp), lambda i: (i, 0)),   # x tile (bf16)
                pl.BlockSpec((Hp, Hp), lambda i: (0, 0)),   # W1^T (resident, bf16)
                pl.BlockSpec((1, Hp), lambda i: (0, 0)),    # b1 (f32)
                pl.BlockSpec((Hp, Hp), lambda i: (0, 0)),   # W2^T (resident, bf16)
                pl.BlockSpec((1, Hp), lambda i: (0, 0)),    # b2 (f32)
            ],
            out_specs=pl.BlockSpec((tm, Hp), lambda i: (i, 0)),
        ),
        compiler_params=pltpu.CompilerParams(
            dimension_semantics=("parallel",),   # shards rows across v7x's 2 TCs
            vmem_limit_bytes=vmem_limit,
        ),
    )(x2, w1_t, b1_r, w2_t, b2_r)

    if pad_h:
        out = out[:, :H]
    return out.reshape(B, L, H)


if __name__ == "__main__":
    B, L, H = 2, 8, 32
    key = jax.random.PRNGKey(0)
    kx, kw1, kb1, kw2, kb2 = jax.random.split(key, 5)

    x = jax.random.normal(kx, (B, L, H), dtype=jnp.float32)
    # Deterministic synthetic params with PyTorch Conv1d shapes (k=1 squeezed):
    w1 = jax.random.normal(kw1, (H, H), dtype=jnp.float32) * 0.05
    b1 = jax.random.normal(kb1, (H,), dtype=jnp.float32) * 0.01
    w2 = jax.random.normal(kw2, (H, H), dtype=jnp.float32) * 0.05
    b2 = jax.random.normal(kb2, (H,), dtype=jnp.float32) * 0.01

    out = pointwise_feedforward(x, w1, b1, w2, b2)
    out = jax.block_until_ready(out)

    # Pure-JAX reference with the same bf16-MXU / f32-accumulate recipe
    # (dropout = identity in eval mode; residual from the bf16 x, as in-kernel).
    xb = x.astype(jnp.bfloat16)
    w1b = w1.astype(jnp.bfloat16)
    w2b = w2.astype(jnp.bfloat16)
    h_ref = jnp.maximum(
        jnp.einsum("blh,oh->blo", xb, w1b,
                   preferred_element_type=jnp.float32) + b1, 0.0)
    y_ref = (jnp.einsum("blh,oh->blo", h_ref.astype(jnp.bfloat16), w2b,
                        preferred_element_type=jnp.float32)
             + b2 + xb.astype(jnp.float32))
    assert jnp.allclose(out, y_ref, atol=2e-3, rtol=2e-3), "mismatch vs reference"

    print("KERNEL_OK")
</pallas_src>

<mosaic_0001>
module attributes {stable_mosaic.version = 11 : i64} {
  func.func @ffn_kernel(%arg0: i32, %arg1: memref<16x128xbf16, #tpu.memory_space<vmem>>, %arg2: memref<128x128xbf16, #tpu.memory_space<vmem>>, %arg3: memref<1x128xf32, #tpu.memory_space<vmem>>, %arg4: memref<128x128xbf16, #tpu.memory_space<vmem>>, %arg5: memref<1x128xf32, #tpu.memory_space<vmem>>, %arg6: memref<16x128xf32, #tpu.memory_space<vmem>>) attributes {dimension_semantics = [#tpu.dimension_semantics<parallel>], iteration_bounds = array<i64: 1>, scalar_prefetch = 0 : i64, scratch_operands = 0 : i64, tpu.core_type = #tpu.core_type<tc>, window_params = [{transform_indices = @transform_0, window_bounds = array<i64: 16, 128>}, {pipeline_mode = #tpu.pipeline_mode<synchronous>, transform_indices = @transform_1, window_bounds = array<i64: 128, 128>}, {pipeline_mode = #tpu.pipeline_mode<synchronous>, transform_indices = @transform_2, window_bounds = array<i64: 1, 128>}, {pipeline_mode = #tpu.pipeline_mode<synchronous>, transform_indices = @transform_3, window_bounds = array<i64: 128, 128>}, {pipeline_mode = #tpu.pipeline_mode<synchronous>, transform_indices = @transform_4, window_bounds = array<i64: 1, 128>}, {transform_indices = @transform_5, window_bounds = array<i64: 16, 128>}]} {
    %c0 = arith.constant 0 : index
    %c0_0 = arith.constant 0 : index
    %0 = vector.load %arg1[%c0, %c0_0] : memref<16x128xbf16, #tpu.memory_space<vmem>>, vector<16x128xbf16>
    %c0_1 = arith.constant 0 : index
    %c0_2 = arith.constant 0 : index
    %1 = vector.load %arg2[%c0_1, %c0_2] : memref<128x128xbf16, #tpu.memory_space<vmem>>, vector<128x128xbf16>
    %cst = arith.constant dense<0.000000e+00> : vector<16x128xf32>
    %2 = tpu.matmul %0, %1, %cst {dimension_numbers = #tpu.dot_dimension_numbers<[1], [0], [0], [1], [0, 0, 1, 1], [], []>} : vector<16x128xbf16>, vector<128x128xbf16>, vector<16x128xf32> -> vector<16x128xf32>
    %c0_3 = arith.constant 0 : index
    %c0_4 = arith.constant 0 : index
    %3 = vector.load %arg3[%c0_3, %c0_4] : memref<1x128xf32, #tpu.memory_space<vmem>>, vector<1x128xf32>
    %4 = vector.broadcast %3 : vector<1x128xf32> to vector<16x128xf32>
    %5 = arith.addf %2, %4 : vector<16x128xf32>
    %cst_5 = arith.constant 0.000000e+00 : f32
    %6 = vector.broadcast %cst_5 : f32 to vector<16x128xf32>
    %7 = arith.maximumf %5, %6 : vector<16x128xf32>
    %8 = arith.truncf %7 : vector<16x128xf32> to vector<16x128xbf16>
    %c0_6 = arith.constant 0 : index
    %c0_7 = arith.constant 0 : index
    %9 = vector.load %arg4[%c0_6, %c0_7] : memref<128x128xbf16, #tpu.memory_space<vmem>>, vector<128x128xbf16>
    %cst_8 = arith.constant dense<0.000000e+00> : vector<16x128xf32>
    %10 = tpu.matmul %8, %9, %cst_8 {dimension_numbers = #tpu.dot_dimension_numbers<[1], [0], [0], [1], [0, 0, 1, 1], [], []>} : vector<16x128xbf16>, vector<128x128xbf16>, vector<16x128xf32> -> vector<16x128xf32>
    %c0_9 = arith.constant 0 : index
    %c0_10 = arith.constant 0 : index
    %11 = vector.load %arg5[%c0_9, %c0_10] : memref<1x128xf32, #tpu.memory_space<vmem>>, vector<1x128xf32>
    %12 = vector.broadcast %11 : vector<1x128xf32> to vector<16x128xf32>
    %13 = arith.addf %10, %12 : vector<16x128xf32>
    %14 = arith.extf %0 : vector<16x128xbf16> to vector<16x128xf32>
    %15 = arith.addf %13, %14 : vector<16x128xf32>
    %c0_11 = arith.constant 0 : index
    %c0_12 = arith.constant 0 : index
    %16 = vector.load %arg6[%c0_11, %c0_12] : memref<16x128xf32, #tpu.memory_space<vmem>>, vector<16x128xf32>
    tpu.vector_store %arg6[%c0_11, %c0_12], %15 {strides = array<i32>} : memref<16x128xf32, #tpu.memory_space<vmem>>, vector<16x128xf32>,
    return
  }
  func.func @transform_0(%arg0: i32) -> (i32, i32) {
    %c0_i32 = arith.constant 0 : i32
    %c0_i32_0 = arith.constant 0 : i32
    return %arg0, %c0_i32 : i32, i32
  }
  func.func @transform_1(%arg0: i32) -> (i32, i32) {
    %c0_i32 = arith.constant 0 : i32
    %c0_i32_0 = arith.constant 0 : i32
    %c0_i32_1 = arith.constant 0 : i32
    return %c0_i32, %c0_i32_0 : i32, i32
  }
  func.func @transform_2(%arg0: i32) -> (i32, i32) {
    %c0_i32 = arith.constant 0 : i32
    %c0_i32_0 = arith.constant 0 : i32
    %c0_i32_1 = arith.constant 0 : i32
    return %c0_i32, %c0_i32_0 : i32, i32
  }
  func.func @transform_3(%arg0: i32) -> (i32, i32) {
    %c0_i32 = arith.constant 0 : i32
    %c0_i32_0 = arith.constant 0 : i32
    %c0_i32_1 = arith.constant 0 : i32
    return %c0_i32, %c0_i32_0 : i32, i32
  }
  func.func @transform_4(%arg0: i32) -> (i32, i32) {
    %c0_i32 = arith.constant 0 : i32
    %c0_i32_0 = arith.constant 0 : i32
    %c0_i32_1 = arith.constant 0 : i32
    return %c0_i32, %c0_i32_0 : i32, i32
  }
  func.func @transform_5(%arg0: i32) -> (i32, i32) {
    %c0_i32 = arith.constant 0 : i32
    %c0_i32_0 = arith.constant 0 : i32
    return %arg0, %c0_i32 : i32, i32
  }
}

</mosaic_0001>

<bundles_post_ra>
// kernel: tpu_custom_call.1
= control target key start
LH: loop header
LB: loop body
LE: loop exit
PB: predicated region body
PF: predicated region fallthrough
CT: control target
= control target key end

     0   :  { %10 = vsyncpa [#allocation3], 0  ;;  %s522_s0 = inlined_call_operand.hbm [shape: bf16[16,128], index: 0, kind: input, shape index: {}]   ;;  %s523_s1 = inlined_call_operand.hbm [shape: bf16[128,128], index: 1, kind: input, shape index: {}]   ;;  %s524_s2 = inlined_call_operand.vmem [shape: f32[1,128], index: 2, kind: input, shape index: {}]   ;;  %s525_s3 = inlined_call_operand.hbm [shape: bf16[128,128], index: 3, kind: input, shape index: {}]   ;;  %s526_s4 = inlined_call_operand.vmem [shape: f32[1,128], index: 4, kind: input, shape index: {}]   ;;  %s527_s5 = inlined_call_operand.hbm [shape: f32[16,128], index: 5, kind: output, shape index: {}]  }
   0x1   :  { %11 = vsyncpa [#allocation6], 0 }
   0x2   :  { %12 = vsyncpa [#allocation4], 0  ;;  %s30_s20 = sshll.u32 %s523_s1, 4  ;;  %s466_s21 = smov [#allocation5]   ;;  %s31_s20 = int_to_ptr.hbm [resolvable:$true] %s30_s20 }
   0x3   :  { %s32_s22 = sshll.u32 %s466_s21, 4  ;;  %s17_s25 = sshll.u32 %s522_s0, 4  ;;  %s33_s22 = int_to_ptr.vmem [resolvable:$true] %s32_s22  ;;  %s18_s25 = int_to_ptr.hbm [resolvable:$true] %s17_s25 }
   0x4   :  { %s467_s26 = smov 64   ;;  %s468_s27 = smov 4  }
   0x5   :  { %38 = dma.hbm_to_vmem [thread:$0]  %s31_s20, 1024, %s33_s22, [#allocation6], %s467_s26, %s467_s26, %s468_s27  }
   0x6   :  { %s469_s28 = smov [#allocation2]   ;;  %s45_s7 = sshll.u32 %s525_s3, 4  ;;  %s46_s7 = int_to_ptr.hbm [resolvable:$true] %s45_s7 }
   0x7   :  { %s19_s29 = sshll.u32 %s469_s28, 4  ;;  %s470_s1 = smov [#allocation7]   ;;  %s20_s29 = int_to_ptr.vmem [resolvable:$true] %s19_s29 }
   0x8   :  { %25 = dma.hbm_to_vmem [thread:$0]  %s18_s25, 128, %s20_s29, [#allocation3], %s467_s26, %s467_s26, %s468_s27  }
   0x9   :  { %s47_s8 = sshll.u32 %s470_s1, 4  ;;  %s48_s8 = int_to_ptr.vmem [resolvable:$true] %s47_s8 }
   0xa   :  { %53 = dma.hbm_to_vmem [thread:$0]  %s46_s7, 1024, %s48_s8, [#allocation6], %s467_s26, %s467_s26, %s468_s27  }
   0xb   :  { %460 = dma.done.wait [#allocation3], 128  }
   0xc   :  { %461 = vsyncadd [#allocation3], 4294967168 }
   0xd   :  { %462 = dma.done.wait [#allocation6], 2048  }
   0xe   :  { %463 = vsyncadd [#allocation6], 4294965248  ;;  %v345_v0 = vld [vmem:[#allocation5 + $0x38] sm:$0xff]  ;;  %v344_v1 = vld [vmem:[#allocation5 + $0x30] sm:$0xff]  ;;  %s471_s11 = smov [#allocation8]   ;;  %s255_s14 = sshll.u32 %s527_s5, 4  ;;  %s256_s14 = int_to_ptr.hbm [resolvable:$true] %s255_s14 }
   0xf   :  { %144 = vmatpush.bf16.msra.mxu0 %v345_v0  ;;  %v353_v2 = vld [vmem:[#allocation7 + $0x38] sm:$0xff]  ;;  %v352_v3 = vld [vmem:[#allocation7 + $0x30] sm:$0xff]  ;;  %v343_v4 = vld [vmem:[#allocation5 + $0x28] sm:$0xff]  ;;  %s472_s15 = smov 128  }
  0x10   :  { %229 = vmatpush.bf16.msra.mxu1 %v353_v2  ;;  %v351_v5 = vld [vmem:[#allocation7 + $0x28] sm:$0xff]  ;;  %v342_v6 = vld [vmem:[#allocation5 + $0x20] sm:$0xff]  ;;  %v341_v8 = vld [vmem:[#allocation5 + $0x18] sm:$0xff] }
  0x11   :  { %v350_v7 = vld [vmem:[#allocation7 + $0x20] sm:$0xff]  ;;  %v340_v9 = vld [vmem:[#allocation5 + $0x10] sm:$0xff]  ;;  %v339_v10 = vld [vmem:[#allocation5 + $0x8] sm:$0xff] }
  0x12   :  { %v338_v11 = vld [vmem:[#allocation5] sm:$0xff]  ;;  %v337_v12 = vld [vmem:[#allocation2] sm:$0xff]  ;;  %v348_v14 = vld [vmem:[#allocation7 + $0x10] sm:$0xff] }
  0x13   :  { %145 = vmatpush.bf16.msra.mxu0 %v344_v1  ;;  %v349_v13 = vld [vmem:[#allocation7 + $0x18] sm:$0xff]  ;;  %v347_v15 = vld [vmem:[#allocation7 + $0x8] sm:$0xff]  ;;  %v346_v16 = vld [vmem:[#allocation7] sm:$0xff] }
  0x14   :  { %230 = vmatpush.bf16.msra.mxu1 %v352_v3  ;;  %v362_v18 = vld [vmem:[%s524_s2] ss:$0 sm:$0xff]  ;;  %s253_s2 = sshll.u32 %s471_s11, 4  ;;  %s254_s2 = int_to_ptr.vmem [resolvable:$true] %s253_s2 }
  0x15   :  { %v68_v25 = vld [vmem:[#allocation2] sm:$0xff]  }
  0x16   :  { %v363_v26 = vld [vmem:[%s526_s4] ss:$0 sm:$0xff]  ;;  %v243_v27 = vunpack.c.l.bf16 %v68_v25  ;;  %v244_v31 = vunpack.c.h.bf16 %v68_v25  ;;  %s473_s4 = smov 8  }
  0x17   :  { %146 = vmatpush.bf16.msra.mxu0 %v343_v4 }
  0x18   :  { %231 = vmatpush.bf16.msra.mxu1 %v351_v5 }
  0x1b   :  { %147 = vmatpush.bf16.msra.mxu0 %v342_v6 }
  0x1c   :  { %232 = vmatpush.bf16.msra.mxu1 %v350_v7 }
  0x1f   :  { %148 = vmatpush.bf16.msra.mxu0 %v341_v8 }
  0x20   :  { %233 = vmatpush.bf16.msra.mxu1 %v349_v13 }
  0x23   :  { %149 = vmatpush.bf16.msra.mxu0 %v340_v9 }
  0x24   :  { %234 = vmatpush.bf16.msra.mxu1 %v348_v14 }
  0x27   :  { %150 = vmatpush.bf16.msra.mxu0 %v339_v10 }
  0x28   :  { %235 = vmatpush.bf16.msra.mxu1 %v347_v15 }
  0x2b   :  { %151 = vmatpush.bf16.msra.mxu0 %v338_v11 }
  0x2c   :  { %236 = vmatpush.bf16.msra.mxu1 %v346_v16 }
  0x2e   :  { %152 = vmatmul.bf16.vlgmr.msra.gmra.mxu0 %v337_v12 }
  0xab   :  { %v153_v17 = vpop.f32.mrf.mxu0 }
  0xac   :  { %v154_v19 = vadd.f32 %v362_v18, %v153_v17 }
  0xae   :  { %v158_v22 = vmax.f32 %v154_v19, 0.0 }
  0xb3   :  { %v155_v20 = vpop.f32.mrf.mxu0 }
  0xb4   :  { %v156_v21 = vadd.f32 %v362_v18, %v155_v20 }
  0xb6   :  { %v159_v23 = vmax.f32 %v156_v21, 0.0 }
  0xb8   :  { %v160_v24 = vpack.c.bf16 %v159_v23, %v158_v22 }
  0xba   :  { %237 = vmatmul.bf16.vlgmr.msra.gmra.mxu1 %v160_v24 }
 0x137   :  { %v238_v28 = vpop.f32.mrf.mxu1 }
 0x138   :  { %v239_v29 = vadd.f32 %v363_v26, %v238_v28 }
 0x13a   :  { %v245_v30 = vadd.f32 %v243_v27, %v239_v29 }
 0x13c   :  { %247 = vst [vmem:[#allocation8] sm:$0xff] %v245_v30 }
 0x13f   :  { %v240_v32 = vpop.f32.mrf.mxu1 }
 0x140   :  { %v241_v33 = vadd.f32 %v363_v26, %v240_v32 }
 0x142   :  { %v246_v34 = vadd.f32 %v244_v31, %v241_v33 }
 0x144   :  { %248 = vst [vmem:[#allocation8 + $0x8] sm:$0xff] %v246_v34 }
 0x145   :  { %261 = dma.vmem_to_hbm [thread:$0]  %s254_s2, 256, %s256_s14, [#allocation4], %s472_s15, %s472_s15, %s473_s4  }
 0x146   :  { %464 = dma.done.wait [#allocation4], 256  }
 0x147   :  { %465 = vsyncadd [#allocation4], 4294967040 }
 0x148   :  { %266 = vsyncpa [#allocation3], 1 }
 0x149   :  { %267 = vsyncpa [#allocation6], 1 }
 0x14a   :  { %268 = vsyncpa [#allocation4], 1 }

</bundles_post_ra>
